<compile_context>
chip_gen: v6e
topology: v6e:2x2x1
jax: 0.10.0
libtpu: 0.0.40
codegen_flags: <defaults>
</compile_context>

<pallas_src>
import jax
import jax.numpy as jnp
from jax.experimental import pallas as pl
from jax.experimental.pallas import tpu as pltpu

_L = 128          # pixels per lane-dense slab row (output lane width)
_ROW_ALIGN = 32   # uint8 packed-sublane tiling: keep tile_rows a multiple of 32


def _mxu_has_int8():
    """v5e/v5p/v6e MXUs take int8 operands (~2x bf16 rate); v7x is fp8-only."""
    try:
        kind = jax.devices()[0].device_kind.lower()
    except Exception:
        return False
    return ("v5" in kind) or ("v6" in kind)


def _hwc_to_chw_kernel(p_ref, x_ref, o_ref):
    # p_ref: (L*C, L*C) one-hot permutation (de-interleave matrix), int8 or bf16.
    # x_ref: (tile_rows, L*C) uint8, lane-dense interleaved pixel slab.
    # o_ref: (C, tile_rows, L) uint8, channel-planar lane-dense output.
    C, _, L = o_ref.shape
    x = x_ref[...]
    if p_ref.dtype == jnp.int8:
        # int8 MXU path (v5e/v6e): shift 0..255 into int8 range; a permutation
        # (exactly one 1 per output column) commutes with the constant offset,
        # so add 128 back after the matmul.  Exact.
        xi = (x.astype(jnp.int32) - 128).astype(jnp.int8)
        y = jnp.dot(xi, p_ref[...], preferred_element_type=jnp.int32) + 128
    else:
        # bf16 MXU path (v7x & older chips): exact for 0..255 (bf16 has 8 bits
        # of significand) with f32 accumulation.
        xb = x.astype(jnp.float32).astype(jnp.bfloat16)
        y = jnp.dot(xb, p_ref[...], preferred_element_type=jnp.float32)
    for c in range(C):  # static unroll, C == 3
        # 128-lane-aligned static slice -> full-width unmasked store.
        o_ref[c, :, :] = y[:, c * L:(c + 1) * L].astype(jnp.uint8)


def to_torch_rgb8(pixel_values, *, max_rows_per_tile=2048):
    """JAX/Pallas equivalent of ToTorchRGB8.forward: HWC uint8 -> CHW uint8."""
    H, W, C = pixel_values.shape
    L = _L
    lcw = L * C
    hw = H * W

    # ---- lane-dense slab layout: pad only to a multiple of L (reshape req.) ----
    n_rows = pl.cdiv(hw, L)                    # slab rows of L pixels each
    hw_pad = n_rows * L
    flat = pixel_values.reshape(hw * C)
    if hw_pad != hw:                            # copy only for non-128-multiple images
        flat = jnp.pad(flat, (0, (hw_pad - hw) * C))
    x2 = flat.reshape(n_rows, lcw)              # (rows, 384) uint8, lane dense

    # ---- tiling: big tiles (amortize ~0.35us/step), multiple of 32 rows, and
    #      >= 2 tiles when possible so v7x's two TensorCores both run.  The
    #      ragged last block is handled by Pallas (OOB output stores masked),
    #      so no wrapper-side pad/strip to a tile multiple.
    max_rows_per_tile = max(_ROW_ALIGN, (max_rows_per_tile // _ROW_ALIGN) * _ROW_ALIGN)
    if n_rows <= _ROW_ALIGN:
        tile_rows = n_rows                      # single full-extent block
    else:
        half = pl.cdiv(pl.cdiv(n_rows, 2), _ROW_ALIGN) * _ROW_ALIGN
        tile_rows = min(max_rows_per_tile, half)
    grid = (pl.cdiv(n_rows, tile_rows),)

    # One-hot permutation: output column c*L + l pulls input lane l*C + c.
    perm_dtype = jnp.int8 if _mxu_has_int8() else jnp.bfloat16
    q = jnp.arange(lcw)
    cols = (q % C) * L + (q // C)
    perm = jax.nn.one_hot(cols, lcw, dtype=perm_dtype)   # (384, 384)

    out3 = pl.pallas_call(
        _hwc_to_chw_kernel,
        out_shape=jax.ShapeDtypeStruct((C, n_rows, L), pixel_values.dtype),
        grid=grid,
        in_specs=[
            pl.BlockSpec((lcw, lcw), lambda i: (0, 0)),        # perm: fetched once
            pl.BlockSpec((tile_rows, lcw), lambda i: (i, 0)),  # pixels: tiled rows
        ],
        out_specs=pl.BlockSpec((C, tile_rows, L), lambda i: (0, i, 0)),
        compiler_params=pltpu.CompilerParams(
            dimension_semantics=("parallel",),          # shards tiles across TCs (v7x)
            vmem_limit_bytes=48 * 1024 * 1024,          # big tiles; safe on 64 MiB v7x
        ),
        cost_estimate=pl.CostEstimate(
            flops=2 * n_rows * lcw * lcw,
            transcendentals=0,
            bytes_accessed=2 * n_rows * lcw + lcw * lcw * perm.dtype.itemsize,
        ),
    )(perm, x2)

    # (C, n_rows, L) -> (C, hw_pad) -> strip (no-op when hw % 128 == 0) -> (C, H, W)
    return out3.reshape(C, hw_pad)[:, :hw].reshape(C, H, W)


if __name__ == "__main__":
    key = jax.random.PRNGKey(0)
    tests = [
        ((16, 16, 3), {}),                            # tiny RGB image, single full block
        ((64, 128, 3), dict(max_rows_per_tile=32)),   # multi-step pipelined grid (2 tiles)
        ((20, 26, 3), {}),                            # H*W not a multiple of 128 (pad+strip)
        ((40, 128, 3), dict(max_rows_per_tile=32)),   # ragged last block (masked OOB stores)
    ]
    for idx, (shape, kwargs) in enumerate(tests):
        key, sub = jax.random.split(key)
        img = jax.random.randint(
            sub, shape, minval=0, maxval=256, dtype=jnp.int32
        ).astype(jnp.uint8)

        out = jax.block_until_ready(to_torch_rgb8(img, **kwargs))
        ref = jnp.transpose(img, (2, 0, 1))

        assert out.shape == ref.shape, (idx, out.shape, ref.shape)
        assert out.dtype == jnp.uint8, (idx, out.dtype)
        assert bool(jnp.all(out == ref)), f"mismatch vs reference transpose in test {idx}"

    print("KERNEL_OK")
</pallas_src>

<mosaic_0001>
module attributes {stable_mosaic.version = 11 : i64} {
  func.func @_hwc_to_chw_kernel(%arg0: i32, %arg1: memref<384x384xbf16, #tpu.memory_space<vmem>>, %arg2: memref<2x384xi8, #tpu.memory_space<vmem>>, %arg3: memref<3x2x128xi8, #tpu.memory_space<vmem>>) attributes {dimension_semantics = [#tpu.dimension_semantics<parallel>], iteration_bounds = array<i64: 1>, scalar_prefetch = 0 : i64, scratch_operands = 0 : i64, tpu.core_type = #tpu.core_type<tc>, window_params = [{pipeline_mode = #tpu.pipeline_mode<synchronous>, transform_indices = @transform_0, window_bounds = array<i64: 384, 384>}, {transform_indices = @transform_1, window_bounds = array<i64: 2, 384>}, {transform_indices = @transform_2, window_bounds = array<i64: 3, 2, 128>}]} {
    %c0 = arith.constant 0 : index
    %c0_0 = arith.constant 0 : index
    %0 = vector.load %arg2[%c0, %c0_0] : memref<2x384xi8, #tpu.memory_space<vmem>>, vector<2x384xi8>
    %1 = arith.uitofp %0 : vector<2x384xi8> to vector<2x384xf32>
    %2 = arith.truncf %1 : vector<2x384xf32> to vector<2x384xbf16>
    %c0_1 = arith.constant 0 : index
    %c0_2 = arith.constant 0 : index
    %3 = vector.load %arg1[%c0_1, %c0_2] : memref<384x384xbf16, #tpu.memory_space<vmem>>, vector<384x384xbf16>
    %cst = arith.constant dense<0.000000e+00> : vector<2x384xf32>
    %4 = tpu.matmul %2, %3, %cst {dimension_numbers = #tpu.dot_dimension_numbers<[1], [0], [0], [1], [0, 0, 1, 1], [], []>} : vector<2x384xbf16>, vector<384x384xbf16>, vector<2x384xf32> -> vector<2x384xf32>
    %5 = vector.extract_strided_slice %4 {offsets = [0, 0], sizes = [2, 128], strides = [1, 1]} : vector<2x384xf32> to vector<2x128xf32>
    %6 = arith.fptoui %5 : vector<2x128xf32> to vector<2x128xi8>
    %c0_3 = arith.constant 0 : index
    %c0_4 = arith.constant 0 : index
    %c0_5 = arith.constant 0 : index
    %7 = vector.load %arg3[%c0_3, %c0_4, %c0_5] : memref<3x2x128xi8, #tpu.memory_space<vmem>>, vector<1x2x128xi8>
    %8 = vector.shape_cast %7 : vector<1x2x128xi8> to vector<2x128xi8>
    %9 = vector.shape_cast %6 : vector<2x128xi8> to vector<1x2x128xi8>
    tpu.vector_store %arg3[%c0_3, %c0_4, %c0_5], %9 {strides = array<i32>} : memref<3x2x128xi8, #tpu.memory_space<vmem>>, vector<1x2x128xi8>,
    %10 = vector.extract_strided_slice %4 {offsets = [0, 128], sizes = [2, 128], strides = [1, 1]} : vector<2x384xf32> to vector<2x128xf32>
    %11 = arith.fptoui %10 : vector<2x128xf32> to vector<2x128xi8>
    %c1 = arith.constant 1 : index
    %c0_6 = arith.constant 0 : index
    %c0_7 = arith.constant 0 : index
    %12 = vector.load %arg3[%c1, %c0_6, %c0_7] : memref<3x2x128xi8, #tpu.memory_space<vmem>>, vector<1x2x128xi8>
    %13 = vector.shape_cast %12 : vector<1x2x128xi8> to vector<2x128xi8>
    %14 = vector.shape_cast %11 : vector<2x128xi8> to vector<1x2x128xi8>
    tpu.vector_store %arg3[%c1, %c0_6, %c0_7], %14 {strides = array<i32>} : memref<3x2x128xi8, #tpu.memory_space<vmem>>, vector<1x2x128xi8>,
    %15 = vector.extract_strided_slice %4 {offsets = [0, 256], sizes = [2, 128], strides = [1, 1]} : vector<2x384xf32> to vector<2x128xf32>
    %16 = arith.fptoui %15 : vector<2x128xf32> to vector<2x128xi8>
    %c2 = arith.constant 2 : index
    %c0_8 = arith.constant 0 : index
    %c0_9 = arith.constant 0 : index
    %17 = vector.load %arg3[%c2, %c0_8, %c0_9] : memref<3x2x128xi8, #tpu.memory_space<vmem>>, vector<1x2x128xi8>
    %18 = vector.shape_cast %17 : vector<1x2x128xi8> to vector<2x128xi8>
    %19 = vector.shape_cast %16 : vector<2x128xi8> to vector<1x2x128xi8>
    tpu.vector_store %arg3[%c2, %c0_8, %c0_9], %19 {strides = array<i32>} : memref<3x2x128xi8, #tpu.memory_space<vmem>>, vector<1x2x128xi8>,
    return
  }
  func.func @transform_0(%arg0: i32) -> (i32, i32) {
    %c0_i32 = arith.constant 0 : i32
    %c0_i32_0 = arith.constant 0 : i32
    %c0_i32_1 = arith.constant 0 : i32
    return %c0_i32, %c0_i32_0 : i32, i32
  }
  func.func @transform_1(%arg0: i32) -> (i32, i32) {
    %c0_i32 = arith.constant 0 : i32
    %c0_i32_0 = arith.constant 0 : i32
    return %arg0, %c0_i32 : i32, i32
  }
  func.func @transform_2(%arg0: i32) -> (i32, i32, i32) {
    %c0_i32 = arith.constant 0 : i32
    %c0_i32_0 = arith.constant 0 : i32
    %c0_i32_1 = arith.constant 0 : i32
    return %c0_i32, %arg0, %c0_i32_0 : i32, i32, i32
  }
}

</mosaic_0001>

<bundles_post_ra>
// kernel: tpu_custom_call.1
= control target key start
LH: loop header
LB: loop body
LE: loop exit
PB: predicated region body
PF: predicated region fallthrough
CT: control target
= control target key end

     0   :  { %7 = vsyncpa [#allocation3], 0  ;;  %s1086_s0 = inlined_call_operand.hbm [shape: bf16[384,384], index: 0, kind: input, shape index: {}]   ;;  %s1087_s1 = inlined_call_operand.hbm [shape: u8[2,384], index: 1, kind: input, shape index: {}]   ;;  %s1088_s2 = inlined_call_operand.vmem [shape: u8[3,2,128], index: 2, kind: output, shape index: {}]  }
   0x1   :  { %8 = vsyncpa [#allocation5], 0  ;;  %s1020_s9 = smov [#allocation2]  }
   0x2   :  { %s14_s10 = sshll.u32 %s1020_s9, 4  ;;  %s15_s10 = int_to_ptr.vmem [resolvable:$true] %s14_s10 }
   0x3   :  { %s984_s11 = scalar_lea.vmem %s15_s10, 9216  ;;  %p989_p1 = scmp.lt.s32.totalorder %s15_s10, %s15_s10 }
   0x4   :  { %p985_p0 = scmp.ne.s32.totalorder %s15_s10, %s984_s11  ;;  %p990_p2 = scmp.lt.s32.totalorder %s984_s11, %s984_s11 }
   0x6   :  { %p991_p3 = por %p990_p2, %p989_p1 }
   0x8   :  { %p992_p4 = pnand %p991_p3, %p985_p0 }
   0xa   :  { %995 = shalt.err (!%p992_p4)
}
   0xb   :  { %s1021_s12 = smov 192   ;;  %s1022_s13 = smov 12  }
   0xc   :  { %20 = dma.hbm_to_vmem [thread:$0]  %s1086_s0, 9216, %s15_s10, [#allocation3], %s1021_s12, %s1021_s12, %s1022_s13  }
   0xd   :  { %s1023_s16 = smov [#allocation4]  }
   0xe   :  { %s27_s17 = sshll.u32 %s1023_s16, 4  ;;  %s28_s17 = int_to_ptr.vmem [resolvable:$true] %s27_s17 }
   0xf   :  { %s1004_s18 = scalar_lea.vmem %s28_s17, 48  ;;  %s1008_s19 = scalar_lea.vmem %s28_s17, 64 }
  0x10   :  { %p1005_p5 = scmp.ne.s32.totalorder %s28_s17, %s1004_s18  ;;  %p1009_p6 = scmp.lt.s32.totalorder %s28_s17, %s28_s17 }
  0x11   :  { %p1010_p7 = scmp.lt.s32.totalorder %s1008_s19, %s1004_s18 }
  0x13   :  { %p1011_p8 = por %p1010_p7, %p1009_p6 }
  0x15   :  { %p1012_p9 = pnand %p1011_p8, %p1005_p5 }
  0x17   :  { %1015 = shalt.err (!%p1012_p9)
}
  0x18   :  { %30 = dma.hbm_to_vmem [thread:$0]  %s1087_s1, 48, %s28_s17, [#allocation5]  }
  0x19   :  { %1016 = dma.done.wait [#allocation3], 9216  }
  0x1a   :  { %1017 = vsyncadd [#allocation3], 4294958080 }
  0x1b   :  { %1018 = dma.done.wait [#allocation5], 48  }
  0x1c   :  { %1019 = vsyncadd [#allocation5], 4294967248  ;;  %v1024_v0 = vmov 0   ;;  %v880_v1 = vld [vmem:[#allocation2 + $0xac] ss:$12 sps:$4 sm:$0xff]   ;;  %vm1026_vm0 = vmmov 0  }
  0x1d   :  { %612 = vmatprep.mubr.bf16.mxu1 %v1024_v0  ;;  %v882_v2 = vld [vmem:[#allocation2 + $0xa8] ss:$12 sps:$4 sm:$0xff]   ;;  %539 = vmatprep.subr.bf16.mxu0 %v880_v1  ;;  %v885_v4 = vld [vmem:[#allocation2 + $0x90] ss:$12 sps:$4 sm:$0xff]   ;;  %v888_v6 = vld [vmem:[#allocation2 + $0x78] ss:$12 sps:$4 sm:$0xff]  }
  0x1e   :  { %v883_v3 = vld [vmem:[#allocation2 + $0x94] ss:$12 sps:$4 sm:$0xff]   ;;  %540 = vmatpush1.bf16.msra.mxu0 %v882_v2  ;;  %v886_v5 = vld [vmem:[#allocation2 + $0x7c] ss:$12 sps:$4 sm:$0xff]   ;;  %v889_v7 = vld [vmem:[#allocation2 + $0x64] ss:$12 sps:$4 sm:$0xff]  }
  0x1f   :  { %541 = vmatprep.subr.bf16.mxu0 %v883_v3  ;;  %v898_v8 = vld [vmem:[#allocation2 + $0x22c] ss:$12 sps:$4 sm:$0xff]   ;;  %v900_v9 = vld [vmem:[#allocation2 + $0x228] ss:$12 sps:$4 sm:$0xff]   ;;  %v906_v12 = vld [vmem:[#allocation2 + $0x210] ss:$12 sps:$4 sm:$0xff]  }
  0x20   :  { %v891_v10 = vld [vmem:[#allocation2 + $0x60] ss:$12 sps:$4 sm:$0xff]   ;;  %580 = vmatprep.subr.bf16.mxu1 %v898_v8  ;;  %v894_v14 = vld [vmem:[#allocation2 + $0x48] ss:$12 sps:$4 sm:$0xff]   ;;  %v912_v17 = vld [vmem:[#allocation2 + $0x1f8] ss:$12 sps:$4 sm:$0xff]  }
  0x21   :  { %581 = vmatpush1.bf16.msra.mxu1 %v900_v9  ;;  %v904_v11 = vld [vmem:[#allocation2 + $0x214] ss:$12 sps:$4 sm:$0xff]   ;;  %v892_v13 = vld [vmem:[#allocation2 + $0x4c] ss:$12 sps:$4 sm:$0xff]   ;;  %v910_v15 = vld [vmem:[#allocation2 + $0x1fc] ss:$12 sps:$4 sm:$0xff]  }
  0x22   :  { %542 = vmatpush1.bf16.msra.mxu0 %v885_v4  ;;  %582 = vmatprep.subr.bf16.mxu1 %v904_v11  ;;  %v895_v16 = vld [vmem:[#allocation2 + $0x34] ss:$12 sps:$4 sm:$0xff]   ;;  %v916_v18 = vld [vmem:[#allocation2 + $0x1e4] ss:$12 sps:$4 sm:$0xff]   ;;  %v901_v20 = vld [vmem:[#allocation2 + $0x1c] ss:$12 sps:$4 sm:$0xff]  }
  0x23   :  { %543 = vmatprep.subr.bf16.mxu0 %v886_v5  ;;  %v897_v19 = vld [vmem:[#allocation2 + $0x30] ss:$12 sps:$4 sm:$0xff]   ;;  %v918_v21 = vld [vmem:[#allocation2 + $0x1e0] ss:$12 sps:$4 sm:$0xff]   ;;  %v903_v23 = vld [vmem:[#allocation2 + $0x18] ss:$12 sps:$4 sm:$0xff]  }
  0x24   :  { %v922_v22 = vld [vmem:[#allocation2 + $0x1cc] ss:$12 sps:$4 sm:$0xff]   ;;  %v907_v24 = vld [vmem:[#allocation2 + $0x4] ss:$12 sps:$4 sm:$0xff]   ;;  %v924_v25 = vld [vmem:[#allocation2 + $0x1c8] ss:$12 sps:$4 sm:$0xff]  }
  0x25   :  { %583 = vmatpush1.bf16.msra.mxu1 %v906_v12  ;;  %v928_v26 = vld [vmem:[#allocation2 + $0x1b4] ss:$12 sps:$4 sm:$0xff]   ;;  %v913_v28 = vld [vmem:[#allocation2 + $0x16c] ss:$12 sps:$4 sm:$0xff]   ;;  %v930_v29 = vld [vmem:[#allocation2 + $0x1b0] ss:$12 sps:$4 sm:$0xff]  }
  0x26   :  { %544 = vmatpush1.bf16.msra.mxu0 %v888_v6  ;;  %584 = vmatprep.subr.bf16.mxu1 %v910_v15  ;;  %v909_v27 = vld [vmem:[#allocation2] ss:$12 sps:$4 sm:$0xff]   ;;  %v934_v30 = vld [vmem:[#allocation2 + $0x19c] ss:$12 sps:$4 sm:$0xff]   ;;  %v936_v34 = vld [vmem:[#allocation2 + $0x198] ss:$12 sps:$4 sm:$0xff]  }
  0x27   :  { %545 = vmatprep.subr.bf16.mxu0 %v889_v7  ;;  %v915_v31 = vld [vmem:[#allocation2 + $0x168] ss:$12 sps:$4 sm:$0xff]   ;;  %v736_v33 = vld.sshfl [vmem:[#allocation4] sm:$0x15 pattern:$0x73625140] }
  0x28   :  { %v919_v32 = vld [vmem:[#allocation2 + $0x154] ss:$12 sps:$4 sm:$0xff]   ;;  %v1048_v35 = vunpack.c.l.u8.bf16 %v736_v33  ;;  %v940_v36 = vld [vmem:[#allocation2 + $0x184] ss:$12 sps:$4 sm:$0xff]   ;;  %v47_v39 = vunpack.c.h.u8.bf16 %v736_v33  ;;  %v925_v41 = vld [vmem:[#allocation2 + $0x13c] ss:$12 sps:$4 sm:$0xff]  }
  0x29   :  { %585 = vmatpush1.bf16.msra.mxu1 %v912_v17  ;;  %v921_v38 = vld [vmem:[#allocation2 + $0x150] ss:$12 sps:$4 sm:$0xff]   ;;  %v942_v40 = vld [vmem:[#allocation2 + $0x180] ss:$12 sps:$4 sm:$0xff]   ;;  %v927_v43 = vld [vmem:[#allocation2 + $0x138] ss:$12 sps:$4 sm:$0xff]  }
  0x2a   :  { %546 = vmatpush1.bf16.msra.mxu0 %v891_v10  ;;  %586 = vmatprep.subr.bf16.mxu1 %v916_v18  ;;  %v738_v37 = vcombine.high %v1048_v35, %v1048_v35  ;;  %v946_v42 = vld [vmem:[#allocation2 + $0x170] ss:$12 sps:$4 sm:$0xff]   ;;  %v1052_v45 = vcombine.low %v47_v39, %v47_v39  ;;  %v951_v47 = vld [vmem:[#allocation2 + $0x158] ss:$12 sps:$4 sm:$0xff]   ;;  %v933_v48 = vld [vmem:[#allocation2 + $0x120] ss:$12 sps:$4 sm:$0xff]   ;;  %v737_v3 = vcombine.low %v1048_v35, %v1048_v35 }
  0x2b   :  { %547 = vmatprep.subr.bf16.mxu0 %v892_v13  ;;  %v931_v44 = vld [vmem:[#allocation2 + $0x124] ss:$12 sps:$4 sm:$0xff]   ;;  %v937_v49 = vld [vmem:[#allocation2 + $0x10c] ss:$12 sps:$4 sm:$0xff]   ;;  %v939_v52 = vld [vmem:[#allocation2 + $0x108] ss:$12 sps:$4 sm:$0xff]  }
  0x2c   :  { %571 = vmatprep.mubr.bf16.mxu0 %v738_v37  ;;  %v947_v46 = vld [vmem:[#allocation2 + $0xb0] ss:$12 sps:$4 sm:$0xff]   ;;  %v952_v50 = vld [vmem:[#allocation2 + $0x98] ss:$12 sps:$4 sm:$0xff]   ;;  %v956_v51 = vld [vmem:[#allocation2 + $0x140] ss:$12 sps:$4 sm:$0xff]  }
  0x2d   :  { %587 = vmatpush1.bf16.msra.mxu1 %v918_v21  ;;  %v943_v53 = vld [vmem:[#allocation2 + $0xf4] ss:$12 sps:$4 sm:$0xff]   ;;  %v945_v56 = vld [vmem:[#allocation2 + $0xf0] ss:$12 sps:$4 sm:$0xff]   ;;  %v950_v60 = vld [vmem:[#allocation2 + $0xd8] ss:$12 sps:$4 sm:$0xff]  }
  0x2e   :  { %548 = vmatpush1.bf16.msra.mxu0 %v894_v14  ;;  %588 = vmatprep.subr.bf16.mxu1 %v922_v22  ;;  %v957_v54 = vld [vmem:[#allocation2 + $0x80] ss:$12 sps:$4 sm:$0xff]   ;;  %v959_v55 = vld [vmem:[#allocation2 + $0x128] ss:$12 sps:$4 sm:$0xff]   ;;  %v962_v59 = vld [vmem:[#allocation2 + $0x110] ss:$12 sps:$4 sm:$0xff]  }
  0x2f   :  { %549 = vmatprep.subr.bf16.mxu0 %v895_v16  ;;  %v948_v57 = vld [vmem:[#allocation2 + $0xdc] ss:$12 sps:$4 sm:$0xff]   ;;  %v953_v62 = vld [vmem:[#allocation2 + $0xc4] ss:$12 sps:$4 sm:$0xff]   ;;  %v955_v0 = vld [vmem:[#allocation2 + $0xc0] ss:$12 sps:$4 sm:$0xff]  }
  0x30   :  { %v960_v58 = vld [vmem:[#allocation2 + $0x68] ss:$12 sps:$4 sm:$0xff]   ;;  %v963_v61 = vld [vmem:[#allocation2 + $0x50] ss:$12 sps:$4 sm:$0xff]   ;;  %v965_v63 = vld [vmem:[#allocation2 + $0xf8] ss:$12 sps:$4 sm:$0xff]  }
  0x31   :  { %589 = vmatpush1.bf16.msra.mxu1 %v924_v25  ;;  %v966_v1 = vld [vmem:[#allocation2 + $0x38] ss:$12 sps:$4 sm:$0xff]   ;;  %v968_v2 = vld [vmem:[#allocation2 + $0xe0] ss:$12 sps:$4 sm:$0xff]   ;;  %v958_v4 = vld [vmem:[#allocation2 + $0x230] ss:$12 sps:$4 sm:$0xff]  }
  0x32   :  { %550 = vmatpush1.bf16.msra.mxu0 %v897_v19  ;;  %590 = vmatprep.subr.bf16.mxu1 %v928_v26  ;;  %v969_v5 = vld [vmem:[#allocation2 + $0x20] ss:$12 sps:$4 sm:$0xff]   ;;  %v1025_v6 = vmov 0.0   ;;  %v971_v7 = vld [vmem:[#allocation2 + $0xc8] ss:$12 sps:$4 sm:$0xff]   ;;  %vm706_vm1 = vcmask 1040384  }
  0x33   :  { %551 = vmatprep.subr.bf16.mxu0 %v901_v20  ;;  %v961_v8 = vld [vmem:[#allocation2 + $0x218] ss:$12 sps:$4 sm:$0xff]   ;;  %v972_v9 = vld [vmem:[#allocation2 + $0x8] ss:$12 sps:$4 sm:$0xff]   ;;  %v964_v10 = vld [vmem:[#allocation2 + $0x200] ss:$12 sps:$4 sm:$0xff]  }
  0x34   :  { %v967_v11 = vld [vmem:[#allocation2 + $0x1e8] ss:$12 sps:$4 sm:$0xff]   ;;  %v970_v12 = vld [vmem:[#allocation2 + $0x1d0] ss:$12 sps:$4 sm:$0xff]   ;;  %v973_v13 = vld [vmem:[#allocation2 + $0x1b8] ss:$12 sps:$4 sm:$0xff]  }
  0x35   :  { %591 = vmatpush1.bf16.msra.mxu1 %v930_v29  ;;  %v974_v14 = vld [vmem:[#allocation2 + $0x1a0] ss:$12 sps:$4 sm:$0xff]   ;;  %v975_v15 = vld [vmem:[#allocation2 + $0x188] ss:$12 sps:$4 sm:$0xff]   ;;  %vm707_vm2 = vsmask.f32 256 }
  0x36   :  { %552 = vmatpush1.bf16.msra.mxu0 %v903_v23  ;;  %592 = vmatprep.subr.bf16.mxu1 %v934_v30  ;;  %vm1058_vm3 = vmand %vm706_vm1, %vm707_vm2 }
  0x37   :  { %553 = vmatprep.subr.bf16.mxu0 %v907_v24 }
  0x39   :  { %593 = vmatpush1.bf16.msra.mxu1 %v936_v34 }
  0x3a   :  { %554 = vmatpush1.bf16.msra.mxu0 %v909_v27  ;;  %594 = vmatprep.subr.bf16.mxu1 %v940_v36 }
  0x3b   :  { %555 = vmatprep.subr.bf16.mxu0 %v913_v28 }
  0x3d   :  { %595 = vmatpush1.bf16.msra.mxu1 %v942_v40 }
  0x3e   :  { %556 = vmatpush2.bf16.msra.mxu0 %v915_v31  ;;  %816 = vmatprep.subr.bf16.mxu1 %v946_v42  ;;  %v812_v42 = vld [vmem:[%s1088_s2 + $0x1] sm:$0x1] }
  0x3f   :  { %557 = vmatprep.subr.bf16.mxu0 %v919_v32 }
  0x40   :  { %613 = vmatmul.mubr.bf16.vlgmr.msra.gmra.mxu1 %v1052_v45 }
  0x41   :  { %817 = vmatpush3.bf16.msra.mxu1 %v947_v46  ;;  %653 = vmatprep.mubr.bf16.mxu1 %v738_v37 }
  0x42   :  { %558 = vmatpush2.bf16.msra.mxu0 %v921_v38  ;;  %818 = vmatprep.subr.bf16.mxu1 %v951_v47  ;;  %v709_v38 = vld [vmem:[%s1088_s2] sm:$0x1] }
  0x43   :  { %559 = vmatprep.subr.bf16.mxu0 %v925_v41 }
  0x45   :  { %819 = vmatpush3.bf16.msra.mxu1 %v952_v50 }
  0x46   :  { %560 = vmatpush2.bf16.msra.mxu0 %v927_v43  ;;  %820 = vmatprep.subr.bf16.mxu1 %v956_v51 }
  0x47   :  { %561 = vmatprep.subr.bf16.mxu0 %v931_v44 }
  0x49   :  { %821 = vmatpush3.bf16.msra.mxu1 %v957_v54 }
  0x4a   :  { %562 = vmatpush2.bf16.msra.mxu0 %v933_v48  ;;  %822 = vmatprep.subr.bf16.mxu1 %v959_v55 }
  0x4b   :  { %563 = vmatprep.subr.bf16.mxu0 %v937_v49 }
  0x4d   :  { %823 = vmatpush3.bf16.msra.mxu1 %v960_v58  ;;  %v814_v58 = vld [vmem:[%s1088_s2 + $0x2] sm:$0x1] }
  0x4e   :  { %564 = vmatpush2.bf16.msra.mxu0 %v939_v52  ;;  %824 = vmatprep.subr.bf16.mxu1 %v962_v59 }
  0x4f   :  { %565 = vmatprep.subr.bf16.mxu0 %v943_v53 }
  0x51   :  { %825 = vmatpush3.bf16.msra.mxu1 %v963_v61 }
  0x52   :  { %566 = vmatpush2.bf16.msra.mxu0 %v945_v56  ;;  %826 = vmatprep.subr.bf16.mxu1 %v965_v63 }
  0x53   :  { %567 = vmatprep.subr.bf16.mxu0 %v948_v57 }
  0x55   :  { %827 = vmatpush3.bf16.msra.mxu1 %v966_v1 }
  0x56   :  { %568 = vmatpush2.bf16.msra.mxu0 %v950_v60  ;;  %828 = vmatprep.subr.bf16.mxu1 %v968_v2 }
  0x57   :  { %569 = vmatprep.subr.bf16.mxu0 %v953_v62 }
  0x59   :  { %829 = vmatpush3.bf16.msra.mxu1 %v969_v5 }
  0x5a   :  { %570 = vmatpush2.bf16.msra.mxu0 %v955_v0  ;;  %830 = vmatprep.subr.bf16.mxu1 %v971_v7 }
  0x5b   :  { %847 = vmatprep.subr.bf16.mxu0 %v1025_v6 }
  0x5d   :  { %572 = vmatmul.mubr.bf16.vlgmr.msra.gmra.mxu0 %v737_v3  ;;  %831 = vmatpush3.bf16.msra.mxu1 %v972_v9 }
  0x5e   :  { %848 = vmatpush3.bf16.msra.mxu0 %v958_v4  ;;  %863 = vmatprep.mubr.msk.bf16.mxu0 %vm1026_vm0, %v1025_v6 }
  0x5f   :  { %849 = vmatprep.subr.bf16.mxu0 %v1025_v6 }
  0x60   :  { %654 = vmatmul.mubr.bf16.vlgmr.msra.gmra.mxu1 %v737_v3 }
  0x62   :  { %850 = vmatpush3.bf16.msra.mxu0 %v961_v8 }
  0x63   :  { %851 = vmatprep.subr.bf16.mxu0 %v1025_v6 }
  0x66   :  { %852 = vmatpush3.bf16.msra.mxu0 %v964_v10 }
  0x67   :  { %853 = vmatprep.subr.bf16.mxu0 %v1025_v6 }
  0x6a   :  { %854 = vmatpush3.bf16.msra.mxu0 %v967_v11 }
  0x6b   :  { %855 = vmatprep.subr.bf16.mxu0 %v1025_v6 }
  0x6e   :  { %856 = vmatpush3.bf16.msra.mxu0 %v970_v12 }
  0x6f   :  { %857 = vmatprep.subr.bf16.mxu0 %v1025_v6 }
  0x72   :  { %858 = vmatpush3.bf16.msra.mxu0 %v973_v13 }
  0x73   :  { %859 = vmatprep.subr.bf16.mxu0 %v1025_v6 }
  0x76   :  { %860 = vmatpush3.bf16.msra.mxu0 %v974_v14 }
  0x77   :  { %861 = vmatprep.subr.bf16.mxu0 %v1025_v6 }
  0x7a   :  { %862 = vmatpush3.bf16.msra.mxu0 %v975_v15 }
  0x7d   :  { %864 = vmatmul.mubr.bf16.vlgmr.msra.gmra.mxu0 %v1052_v45 }
 0x100   :  { %v614_v16 = vpop.f32.mrf.mxu1 }
 0x102   :  { %v616_v17 = vpop.f32.mrf.mxu1 }
 0x104   :  { %v618_v18 = vpop.f32.mrf.mxu1 }
 0x106   :  { %v619_v19 = vpop.f32.mrf.mxu1 }
 0x11d   :  { %v573_v20 = vpop.f32.mrf.mxu0 }
 0x11e   :  { %v615_v21 = vadd.f32 %v614_v16, %v573_v20 }
 0x11f   :  { %v575_v22 = vpop.f32.mrf.mxu0 }
 0x120   :  { %v701_v23 = vmax.f32 %v615_v21, 0.0  ;;  %v617_v24 = vadd.f32 %v616_v17, %v575_v22  ;;  %v832_v31 = vpop.f32.mrf.mxu1 }
 0x121   :  { %v577_v25 = vpop.f32.mrf.mxu0 }
 0x122   :  { %v702_v26 = vmin.f32 %v701_v23, 255.0  ;;  %v712_v27 = vmax.f32 %v617_v24, 0.0  ;;  %v833_v34 = vpop.f32.mrf.mxu1 }
 0x123   :  { %v578_v28 = vpop.f32.mrf.mxu0  ;;  %v834_v47 = vadd.f32 %v833_v34, %v832_v31 }
 0x124   :  { %v867_v29 = vtrunc.f32 %v702_v26  ;;  %v713_v30 = vmin.f32 %v712_v27, 255.0  ;;  %v835_v39 = vpop.f32.mrf.mxu1 }
 0x126   :  { %v868_v32 = vcvt.f32.s32 %v867_v29  ;;  %v869_v33 = vtrunc.f32 %v713_v30  ;;  %v836_v43 = vpop.f32.mrf.mxu1 }
 0x128   :  { %v704_v35 = vpack.c.b16 %v868_v32, %v868_v32  ;;  %v870_v36 = vcvt.f32.s32 %v869_v33 }
 0x12a   :  { %v705_v40 = vpack.c.b8 %v704_v35, %v704_v35  ;;  %v715_v41 = vpack.c.b16 %v870_v36, %v870_v36 }
 0x12c   :  { %v710_v44 = vsel %vm1058_vm3, %v705_v40, %v709_v38  ;;  %v716_v45 = vpack.c.b8 %v715_v41, %v715_v41 }
 0x12d   :  { %711 = vst [vmem:[%s1088_s2] sm:$0x1] %v710_v44 }
 0x12e   :  { %v719_v46 = vsel %vm1058_vm3, %v716_v45, %v812_v42 }
 0x12f   :  { %813 = vst [vmem:[%s1088_s2 + $0x1] sm:$0x1] %v719_v46 }
 0x13d   :  { %v695_v48 = vpop.f32.mrf.mxu0 }
 0x13e   :  { %v696_v49 = vadd.f32 %v834_v47, %v695_v48 }
 0x13f   :  { %v865_v50 = vpop.f32.mrf.mxu0 }
 0x140   :  { %v721_v51 = vmax.f32 %v696_v49, 0.0 }
 0x141   :  { %v698_v52 = vpop.f32.mrf.mxu0 }
 0x142   :  { %v722_v53 = vmin.f32 %v721_v51, 255.0 }
 0x143   :  { %v866_v54 = vpop.f32.mrf.mxu0 }
 0x144   :  { %v871_v55 = vtrunc.f32 %v722_v53 }
 0x146   :  { %v872_v56 = vcvt.f32.s32 %v871_v55 }
 0x148   :  { %v724_v57 = vpack.c.b16 %v872_v56, %v872_v56 }
 0x14a   :  { %v725_v59 = vpack.c.b8 %v724_v57, %v724_v57 }
 0x14c   :  { %v728_v60 = vsel %vm1058_vm3, %v725_v59, %v814_v58 }
 0x14d   :  { %815 = vst [vmem:[%s1088_s2 + $0x2] sm:$0x1] %v728_v60 }
 0x14e   :  { %734 = vsyncpa [#allocation3], 1 }
 0x14f   :  { %735 = vsyncpa [#allocation5], 1 }

</bundles_post_ra>
